<compile_context>
chip_gen: v7x
topology: tpu7x:2x2x1
jax: 0.10.0
libtpu: 0.0.40
codegen_flags: <defaults>
</compile_context>

<pallas_src>
import jax
import jax.numpy as jnp
import numpy as np
from jax.experimental import pallas as pl
from jax.experimental.pallas import tpu as pltpu

EPS = 1e-5
LANE = 128


def _round_up(n, m):
    return ((n + m - 1) // m) * m


def _pad2d(a, rows, cols, fill=0.0):
    r, c = a.shape
    if (r, c) == (rows, cols):
        return a
    return jnp.pad(a, ((0, rows - r), (0, cols - c)), constant_values=fill)


def _tpu_vmem_capacity():
    # Per-core VMEM capacity (v5e/v6e: 128 MiB, v7x: 64 MiB).  Fall back to the
    # most conservative figure if the query is unavailable.
    try:
        return int(pltpu.get_tpu_info().vmem_capacity_bytes)
    except Exception:
        return 64 << 20


def _vmem_budget(working_set_bytes, vmem_cap):
    # Working set (double-buffering already counted by the caller) + headroom,
    # clamped per generation: <=32 MiB on 64 MiB chips (v7x), <=64 MiB otherwise.
    cap = (32 << 20) if vmem_cap <= (96 << 20) else (64 << 20)
    return int(min(max(working_set_bytes + (4 << 20), 8 << 20), cap))


def _pick_feat_tile(h_p, k_p, B, vmem_cap):
    """Widest 128-multiple feature tile that (a) evenly divides h_p, (b) keeps
    at least 2 parallel grid steps on 2-TC chips (v7x), (c) fits the VMEM budget."""
    n_lane_blocks = h_p // LANE
    target_tiles = 2 if vmem_cap <= (96 << 20) else 1   # v7x: keep both TCs busy
    budget = max(vmem_cap // 2 - (4 << 20), 8 << 20)
    best = LANE
    for blocks in range(n_lane_blocks, 0, -1):
        if n_lane_blocks % blocks:
            continue
        tile = blocks * LANE
        if tile > LANE and (h_p // tile) < target_tiles:
            continue                       # would leave a TensorCore idle on v7x
        ws = (B * k_p * 2                  # resident bf16 activations
              + 2 * k_p * tile * 2         # double-buffered bf16 weight tile
              + 2 * 2 * tile * 4           # double-buffered gamma/beta tiles
              + 2 * B * tile * 4)          # double-buffered f32 output tile
        if ws <= budget:
            best = tile
            break
    return best


# ----------------------------- forward(x) ------------------------------------
# One grid step = one feature tile of hidden units.  BatchNorm batch stats are
# per-feature over the (fully resident) batch, so feature tiles are independent.

def _fwd_block_kernel(x_ref, w_ref, g_ref, b_ref, o_ref):
    # Linear(bias=False): bf16 operands, f32 MXU accumulation.
    z = jnp.dot(x_ref[...], w_ref[...], preferred_element_type=jnp.float32)
    # BatchNorm1d (training mode): biased batch variance, two-pass (no E[z^2]-mu^2
    # cancellation), folded affine, fused ReLU.
    inv_n = 1.0 / z.shape[0]
    mean = jnp.sum(z, axis=0, keepdims=True) * inv_n
    centered = z - mean
    var = jnp.sum(centered * centered, axis=0, keepdims=True) * inv_n
    scale = g_ref[...] * jax.lax.rsqrt(var + EPS)
    o_ref[...] = jnp.maximum(centered * scale + b_ref[...], 0.0).astype(o_ref.dtype)


def action_proj_forward(x, w1, gamma, beta, *, out_dtype=jnp.float32):
    """ActionMultiLayerProj.forward(x): cat((x, x), 1) -> Linear(no bias) -> BN -> ReLU.

    The self-concat is folded into the weight (exact in f32):
        cat(x, x) @ W1.T == x @ (W1[:, :f] + W1[:, f:]).T
    which halves K for the MXU and halves the activation DMA bytes.
    Set out_dtype=jnp.bfloat16 if the consumer is another bf16 matmul.
    """
    B, f = x.shape
    H, in_f = w1.shape
    assert in_f == 2 * f, "forward() feeds cat((x, x), dim=1) into Linear(in_feature, ...)"

    k_p = _round_up(f, LANE)
    h_p = _round_up(H, LANE)
    vmem_cap = _tpu_vmem_capacity()
    feat_tile = _pick_feat_tile(h_p, k_p, B, vmem_cap)

    # Fold the concat into the weight in f32, then cast once to bf16 and pad.
    w_folded_t = (w1[:, :f] + w1[:, f:]).T                      # (f, H), f32
    x_pad = _pad2d(x.astype(jnp.bfloat16), B, k_p)
    w_pad = _pad2d(w_folded_t.astype(jnp.bfloat16), k_p, h_p)
    g_pad = _pad2d(gamma.reshape(1, H), 1, h_p, fill=1.0)        # 1s keep pad cols benign
    b_pad = _pad2d(beta.reshape(1, H), 1, h_p)

    grid = (h_p // feat_tile,)
    working_set = (x_pad.nbytes + 2 * k_p * feat_tile * 2
                   + 2 * 2 * feat_tile * 4 + 2 * B * feat_tile * 4)
    cost = pl.CostEstimate(
        flops=2 * B * k_p * h_p, transcendentals=h_p,
        bytes_accessed=(x_pad.nbytes + w_pad.nbytes + g_pad.nbytes + b_pad.nbytes
                        + B * h_p * jnp.dtype(out_dtype).itemsize))

    out = pl.pallas_call(
        _fwd_block_kernel,
        out_shape=jax.ShapeDtypeStruct((B, h_p), out_dtype),
        grid=grid,
        in_specs=[
            pl.BlockSpec((B, k_p), lambda j: (0, 0)),            # activations (resident)
            pl.BlockSpec((k_p, feat_tile), lambda j: (0, j)),    # weight tile
            pl.BlockSpec((1, feat_tile), lambda j: (0, j)),      # gamma tile
            pl.BlockSpec((1, feat_tile), lambda j: (0, j)),      # beta tile
        ],
        out_specs=pl.BlockSpec((B, feat_tile), lambda j: (0, j)),
        compiler_params=pltpu.CompilerParams(
            dimension_semantics=("parallel",),
            vmem_limit_bytes=_vmem_budget(working_set, vmem_cap)),
        cost_estimate=cost,
    )(x_pad, w_pad, g_pad, b_pad)
    return out[:, :H]


# --------------------------- forward_all(x, y) --------------------------------
# BN couples the whole batch and the layers chain, so for these head shapes the
# whole (padded, bf16-weight) stack runs as one resident program with full-array
# VMEM specs (no grid => no pipeline double-buffering of the weights).

def _make_stack_kernel(n_blocks):
    def kernel(*refs):
        x_ref, o_ref = refs[0], refs[-1]
        p = refs[1:-1]          # W1, g1, b1, ..., Wn, gn, bn, Wout, bout (padded)
        h = x_ref[...]          # bf16 activations
        inv_n = 1.0 / h.shape[0]
        i = 0
        for _ in range(n_blocks):
            w_ref, g_ref, b_ref = p[i], p[i + 1], p[i + 2]
            i += 3
            z = jnp.dot(h, w_ref[...], preferred_element_type=jnp.float32)
            mean = jnp.sum(z, axis=0, keepdims=True) * inv_n
            centered = z - mean
            var = jnp.sum(centered * centered, axis=0, keepdims=True) * inv_n
            scale = g_ref[...] * jax.lax.rsqrt(var + EPS)
            # BN/ReLU math in f32; re-feed the MXU in bf16.
            h = jnp.maximum(centered * scale + b_ref[...], 0.0).astype(jnp.bfloat16)
        wo_ref, bo_ref = p[i], p[i + 1]
        out = jnp.dot(h, wo_ref[...], preferred_element_type=jnp.float32) + bo_ref[...]
        o_ref[...] = out.astype(o_ref.dtype)
    return kernel


def action_proj_forward_all(x, y, params, n_blocks):
    """ActionMultiLayerProj.forward_all(x, y).

    `params` is the flat PyTorch-layout list
      [W1 (hid,in), g1 (hid,), b1 (hid,), ..., Wout (out,hid), bout (out,)].
    """
    B = x.shape[0]
    vmem_cap = _tpu_vmem_capacity()
    h_in = jnp.concatenate([x, y], axis=1)
    k_p = _round_up(h_in.shape[1], LANE)
    inputs = [_pad2d(h_in.astype(jnp.bfloat16), B, k_p)]

    flops, trans = 0, 0
    idx = 0
    for _ in range(n_blocks):
        w, g, b = params[idx], params[idx + 1], params[idx + 2]
        idx += 3
        hid = w.shape[0]
        hid_p = _round_up(hid, LANE)
        inputs.append(_pad2d(w.T.astype(jnp.bfloat16), k_p, hid_p))
        inputs.append(_pad2d(g.reshape(1, hid), 1, hid_p, fill=1.0))
        inputs.append(_pad2d(b.reshape(1, hid), 1, hid_p))
        flops += 2 * B * k_p * hid_p
        trans += hid_p
        k_p = hid_p
    wo, bo = params[idx], params[idx + 1]
    n_out = wo.shape[0]
    o_p = _round_up(n_out, LANE)
    inputs.append(_pad2d(wo.T.astype(jnp.bfloat16), k_p, o_p))
    inputs.append(_pad2d(bo.reshape(1, n_out), 1, o_p))
    flops += 2 * B * k_p * o_p

    working_set = sum(a.nbytes for a in inputs) + B * o_p * 4
    cost = pl.CostEstimate(flops=flops, transcendentals=trans,
                           bytes_accessed=working_set)

    vmem_spec = pl.BlockSpec(memory_space=pltpu.MemorySpace.VMEM)
    out = pl.pallas_call(
        _make_stack_kernel(n_blocks),
        out_shape=jax.ShapeDtypeStruct((B, o_p), jnp.float32),
        in_specs=[vmem_spec] * len(inputs),
        out_specs=vmem_spec,
        compiler_params=pltpu.CompilerParams(
            vmem_limit_bytes=_vmem_budget(working_set, vmem_cap)),
        cost_estimate=cost,
    )(*inputs)
    return out[:, :n_out]


# ------------------------------ pure-JAX refs ---------------------------------

def forward_ref(x, w1, gamma, beta, mxu_dtype=jnp.float32, fold_cat=False):
    """Mirror of ActionMultiLayerProj.forward (training-mode BN).
    fold_cat=True + mxu_dtype=bf16 mirrors the kernel's exact operand path."""
    f = x.shape[1]
    if fold_cat:
        h = x
        w_t = (w1[:, :f] + w1[:, f:]).T
    else:
        h = jnp.concatenate([x, x], axis=1)
        w_t = w1.T
    z = jnp.dot(h.astype(mxu_dtype), w_t.astype(mxu_dtype),
                preferred_element_type=jnp.float32)
    mean = jnp.mean(z, axis=0, keepdims=True)
    var = jnp.mean(jnp.square(z - mean), axis=0, keepdims=True)
    return jnp.maximum((z - mean) * jax.lax.rsqrt(var + EPS) * gamma + beta, 0.0)


def forward_all_ref(x, y, params, n_blocks, mxu_dtype=jnp.float32):
    h = jnp.concatenate([x, y], axis=1).astype(jnp.float32)
    idx = 0
    for _ in range(n_blocks):
        w, g, b = params[idx], params[idx + 1], params[idx + 2]
        idx += 3
        z = jnp.dot(h.astype(mxu_dtype), w.T.astype(mxu_dtype),
                    preferred_element_type=jnp.float32)
        mean = jnp.mean(z, axis=0, keepdims=True)
        var = jnp.mean(jnp.square(z - mean), axis=0, keepdims=True)
        h = jnp.maximum((z - mean) * jax.lax.rsqrt(var + EPS) * g + b, 0.0)
    wo, bo = params[idx], params[idx + 1]
    return jnp.dot(h.astype(mxu_dtype), wo.T.astype(mxu_dtype),
                   preferred_element_type=jnp.float32) + bo


def init_module_params(key, n, in_feature, hidden_feature, out_feature):
    """Flat PyTorch-layout parameters of ActionMultiLayerProj(n, ..., bias=False).
    Linear weights use the default U(-1/sqrt(fan_in), .) init; the BN affine params
    get synthetic non-default values so the scale/shift path is really exercised."""
    params = []
    for i in range(n):
        in_f = in_feature if i == 0 else hidden_feature
        key, kw, kg, kb = jax.random.split(key, 4)
        bound = 1.0 / np.sqrt(in_f)
        params.append(jax.random.uniform(kw, (hidden_feature, in_f), jnp.float32,
                                         -bound, bound))
        params.append(jax.random.uniform(kg, (hidden_feature,), jnp.float32, 0.5, 1.5))
        params.append(jax.random.uniform(kb, (hidden_feature,), jnp.float32, -0.2, 0.2))
    key, kw, kb = jax.random.split(key, 3)
    bound = 1.0 / np.sqrt(hidden_feature)
    params.append(jax.random.uniform(kw, (out_feature, hidden_feature), jnp.float32,
                                     -bound, bound))
    params.append(jax.random.uniform(kb, (out_feature,), jnp.float32, -bound, bound))
    return params


if __name__ == "__main__":
    # ActionMultiLayerProj(n=2, in_feature=64, hidden_feature=256, out_feature=16, bias=False)
    # forward(x) takes x with in_feature // 2 = 32 features (it concatenates x with itself).
    n_blocks = 2
    batch = 8
    in_feature = 64
    hidden_feature = 256
    out_feature = 16

    key = jax.random.PRNGKey(0)
    kx, ky, kp = jax.random.split(key, 3)
    params = init_module_params(kp, n_blocks, in_feature, hidden_feature, out_feature)
    w1, g1, b1 = params[0], params[1], params[2]

    x = jax.random.normal(kx, (batch, in_feature // 2), jnp.float32)
    y = jax.random.normal(ky, (batch, in_feature // 2), jnp.float32)

    # --- forward(x): the module's forward pass --------------------------------
    out_fwd = jax.block_until_ready(action_proj_forward(x, w1, g1, b1))
    # Tight check vs a reference using the same folded bf16 MXU operands.
    np.testing.assert_allclose(
        np.asarray(out_fwd),
        np.asarray(forward_ref(x, w1, g1, b1, mxu_dtype=jnp.bfloat16, fold_cat=True)),
        rtol=1e-3, atol=1e-3)
    # Sanity check vs the full-f32 PyTorch math (tolerance covers bf16 MXU rounding).
    np.testing.assert_allclose(
        np.asarray(out_fwd),
        np.asarray(forward_ref(x, w1, g1, b1, mxu_dtype=jnp.float32)),
        rtol=5e-2, atol=5e-2)

    # --- forward_all(x, y): the full projection stack -------------------------
    # Note: inter-layer activations are recast to bf16 inside the kernel (extra
    # rounding vs the PyTorch f32 path) -- covered by the bf16 reference below.
    out_all = jax.block_until_ready(action_proj_forward_all(x, y, params, n_blocks))
    np.testing.assert_allclose(
        np.asarray(out_all),
        np.asarray(forward_all_ref(x, y, params, n_blocks, mxu_dtype=jnp.bfloat16)),
        rtol=2e-2, atol=2e-2)

    print("KERNEL_OK")
</pallas_src>

<mosaic_0001>
module attributes {stable_mosaic.version = 11 : i64} {
  func.func @_fwd_block_kernel(%arg0: i32, %arg1: memref<8x128xbf16, #tpu.memory_space<vmem>>, %arg2: memref<128x128xbf16, #tpu.memory_space<vmem>>, %arg3: memref<1x128xf32, #tpu.memory_space<vmem>>, %arg4: memref<1x128xf32, #tpu.memory_space<vmem>>, %arg5: memref<8x128xf32, #tpu.memory_space<vmem>>) attributes {dimension_semantics = [#tpu.dimension_semantics<parallel>], iteration_bounds = array<i64: 2>, scalar_prefetch = 0 : i64, scratch_operands = 0 : i64, tpu.core_type = #tpu.core_type<tc>, window_params = [{pipeline_mode = #tpu.pipeline_mode<synchronous>, transform_indices = @transform_0, window_bounds = array<i64: 8, 128>}, {transform_indices = @transform_1, window_bounds = array<i64: 128, 128>}, {transform_indices = @transform_2, window_bounds = array<i64: 1, 128>}, {transform_indices = @transform_3, window_bounds = array<i64: 1, 128>}, {transform_indices = @transform_4, window_bounds = array<i64: 8, 128>}]} {
    %c0 = arith.constant 0 : index
    %c0_0 = arith.constant 0 : index
    %0 = vector.load %arg1[%c0, %c0_0] : memref<8x128xbf16, #tpu.memory_space<vmem>>, vector<8x128xbf16>
    %c0_1 = arith.constant 0 : index
    %c0_2 = arith.constant 0 : index
    %1 = vector.load %arg2[%c0_1, %c0_2] : memref<128x128xbf16, #tpu.memory_space<vmem>>, vector<128x128xbf16>
    %cst = arith.constant dense<0.000000e+00> : vector<8x128xf32>
    %2 = tpu.matmul %0, %1, %cst {dimension_numbers = #tpu.dot_dimension_numbers<[1], [0], [0], [1], [0, 0, 1, 1], [], []>} : vector<8x128xbf16>, vector<128x128xbf16>, vector<8x128xf32> -> vector<8x128xf32>
    %cst_3 = arith.constant dense<0.000000e+00> : vector<128xf32>
    %3 = vector.multi_reduction <add>, %2, %cst_3 [0] : vector<8x128xf32> to vector<128xf32>
    %4 = vector.shape_cast %3 : vector<128xf32> to vector<1x128xf32>
    %cst_4 = arith.constant 1.250000e-01 : f32
    %5 = vector.broadcast %cst_4 : f32 to vector<1x128xf32>
    %6 = arith.mulf %4, %5 : vector<1x128xf32>
    %7 = vector.broadcast %6 : vector<1x128xf32> to vector<8x128xf32>
    %8 = arith.subf %2, %7 : vector<8x128xf32>
    %9 = arith.mulf %8, %8 : vector<8x128xf32>
    %cst_5 = arith.constant dense<0.000000e+00> : vector<128xf32>
    %10 = vector.multi_reduction <add>, %9, %cst_5 [0] : vector<8x128xf32> to vector<128xf32>
    %11 = vector.shape_cast %10 : vector<128xf32> to vector<1x128xf32>
    %cst_6 = arith.constant 1.250000e-01 : f32
    %12 = vector.broadcast %cst_6 : f32 to vector<1x128xf32>
    %13 = arith.mulf %11, %12 : vector<1x128xf32>
    %c0_7 = arith.constant 0 : index
    %c0_8 = arith.constant 0 : index
    %14 = vector.load %arg3[%c0_7, %c0_8] : memref<1x128xf32, #tpu.memory_space<vmem>>, vector<1x128xf32>
    %cst_9 = arith.constant 9.99999974E-6 : f32
    %15 = vector.broadcast %cst_9 : f32 to vector<1x128xf32>
    %16 = arith.addf %13, %15 : vector<1x128xf32>
    %17 = math.rsqrt %16 : vector<1x128xf32>
    %18 = arith.mulf %14, %17 : vector<1x128xf32>
    %19 = vector.broadcast %18 : vector<1x128xf32> to vector<8x128xf32>
    %20 = arith.mulf %8, %19 : vector<8x128xf32>
    %c0_10 = arith.constant 0 : index
    %c0_11 = arith.constant 0 : index
    %21 = vector.load %arg4[%c0_10, %c0_11] : memref<1x128xf32, #tpu.memory_space<vmem>>, vector<1x128xf32>
    %22 = vector.broadcast %21 : vector<1x128xf32> to vector<8x128xf32>
    %23 = arith.addf %20, %22 : vector<8x128xf32>
    %cst_12 = arith.constant 0.000000e+00 : f32
    %24 = vector.broadcast %cst_12 : f32 to vector<8x128xf32>
    %25 = arith.maximumf %23, %24 : vector<8x128xf32>
    %c0_13 = arith.constant 0 : index
    %c0_14 = arith.constant 0 : index
    %26 = vector.load %arg5[%c0_13, %c0_14] : memref<8x128xf32, #tpu.memory_space<vmem>>, vector<8x128xf32>
    tpu.vector_store %arg5[%c0_13, %c0_14], %25 {strides = array<i32>} : memref<8x128xf32, #tpu.memory_space<vmem>>, vector<8x128xf32>,
    return
  }
  func.func @transform_0(%arg0: i32) -> (i32, i32) {
    %c0_i32 = arith.constant 0 : i32
    %c0_i32_0 = arith.constant 0 : i32
    %c0_i32_1 = arith.constant 0 : i32
    return %c0_i32, %c0_i32_0 : i32, i32
  }
  func.func @transform_1(%arg0: i32) -> (i32, i32) {
    %c0_i32 = arith.constant 0 : i32
    %c0_i32_0 = arith.constant 0 : i32
    return %c0_i32, %arg0 : i32, i32
  }
  func.func @transform_2(%arg0: i32) -> (i32, i32) {
    %c0_i32 = arith.constant 0 : i32
    %c0_i32_0 = arith.constant 0 : i32
    return %c0_i32, %arg0 : i32, i32
  }
  func.func @transform_3(%arg0: i32) -> (i32, i32) {
    %c0_i32 = arith.constant 0 : i32
    %c0_i32_0 = arith.constant 0 : i32
    return %c0_i32, %arg0 : i32, i32
  }
  func.func @transform_4(%arg0: i32) -> (i32, i32) {
    %c0_i32 = arith.constant 0 : i32
    %c0_i32_0 = arith.constant 0 : i32
    return %c0_i32, %arg0 : i32, i32
  }
}

</mosaic_0001>

<bundles_post_ra>
// kernel: tpu_custom_call.1
= control target key start
LH: loop header
LB: loop body
LE: loop exit
PB: predicated region body
PF: predicated region fallthrough
CT: control target
= control target key end

     0   :  { %9 = vsyncpa [#allocation3], 0  ;;  %s1005_s0 = inlined_call_operand.hbm [shape: bf16[8,128], index: 0, kind: input, shape index: {}]   ;;  %s1006_s1 = inlined_call_operand.hbm [shape: bf16[128,256], index: 1, kind: input, shape index: {}]   ;;  %s1007_s2 = inlined_call_operand.vmem [shape: f32[1,256], index: 2, kind: input, shape index: {}]   ;;  %s1008_s3 = inlined_call_operand.vmem [shape: f32[1,256], index: 3, kind: input, shape index: {}]   ;;  %s1009_s4 = inlined_call_operand.hbm [shape: f32[8,256], index: 4, kind: output, shape index: {}]  }
   0x1   :  { %10 = vsyncpa [#allocation6], 0 }
   0x2   :  { %12 = vsyncpa [#allocation6 + $0x1], 0 }
   0x3   :  { %13 = vsyncpa [#allocation4], 0 }
   0x4   :  { %15 = vsyncpa [#allocation4 + $0x1], 0  ;;  %s800_s15 = smov 0   ;;  %s802_s16 = smov 0  }
   0x5   :  { %s804_s17 = smov 0   ;;  %s806_s18 = smov 0  }
   0x6 LB: > { %s821_s19 = sadd.s32 4294967295, %s765_s18   ;;  %s513_s20 = sadd.s32 4294967294, %s765_s18   ;;  %s765_s18 = sphi %s806_s18, %s1034_s18   ;;  %s761_s17 = sphi %s804_s17, %s1033_s17   ;;  %s757_s16 = sphi %s802_s16, %s1032_s16   ;;  %s753_s15 = sphi %s800_s15, %s1031_s15  }
   0x7   : > { %s825_s21 = sadd.s32 1, %s765_s18   ;;  %s49_s22 = sadd.s32 1, %s761_s17 }
   0x8   : > { %s46_s23 = ssub.s32 %s765_s18, %s825_s21  ;;  %p56_p0 = scmp.ne.s32.totalorder %s761_s17, %s757_s16 }
   0x9   : > { %p47_p1 = scmp.eq.s32.totalorder %s46_s23, 0  ;;  %p57_p2 = scmp.eq.s32.totalorder %s765_s18, 0 }
   0xa   : > { %p62_p3 = scmp.ne.s32.totalorder %s757_s16, %s753_s15  ;;  %p1010_p4 = scmp.eq.s32.totalorder %s821_s19, 0 }
   0xb   : > { %s837_s24 = scalar_select %p47_p1, %s761_s17, %s49_s22  }
   0xc   : > { %p839_p5 = por %p57_p2, %p56_p0  ;;  %p845_p6 = por %p1010_p4, %p62_p3 }
   0xd   : > { %p138_p7 = scmp.eq.s32.totalorder %s821_s19, 1  ;;  %p144_p8 = scmp.eq.s32.totalorder %s513_s20, 1 }
   0xe   : > { %s1016_s26 = scalar_select %p845_p6, 1, 0 }
   0xf   : > { %p514_p9 = scmp.ge.s32.totalorder %s765_s18, 1  ;;  %p151_p10 = scmp.lt.s32.totalorder %s765_s18, 3 }
  0x10   : > { %p852_p11 = por %p138_p7, %p56_p0  ;;  %p856_p12 = por %p144_p8, %p62_p3 }
  0x11   : > { %p860_p13 = pnand %p514_p9, %p151_p10  ;;  %s767_s30 = smov [#allocation2]  }
  0x12   : > { %s1017_s27 = scalar_select %p852_p11, 1, 0 }
  0x13   : > { %s1018_s28 = scalar_select %p856_p12, 1, 0 }
  0x14   : > { %s1019_s29 = scalar_select %p860_p13, 1, 0 }
  0x15   : > { %p573_p2 = pneg %p860_p13  ;;  %s164_s5 = sshll.u32 %s767_s30, 4  ;;  %s165_s5 = int_to_ptr.vmem [resolvable:$true] %s164_s5 }
  0x16   : > { %p586_p4 = scmp.lt.s32.totalorder %s765_s18, 2  ;;  %p1020_p0 = scmp.eq.s32.totalorder %s821_s19, 0 }
  0x17   : > { %s175_s7 = sand.u32 1, %s761_s17   ;;  %s637_s12 = scalar_lea.hbm %s1005_s0, 64 }
  0x18   : > { %p870_p7 = pnand %p573_p2, %p1020_p0  ;;  %p877_p3 = pnand %p586_p4, %p839_p5 }
  0x19   : > { %s517_s9 = sshll.u32 %s175_s7, 6  ;;  %p638_p8 = scmp.ne.s32.totalorder %s1005_s0, %s637_s12 }
  0x1a   : > { %s1022_s8 = scalar_select %p877_p3, 1, 0 }
  0x1b   : > { %p639_p9 = pneg %p870_p7  ;;  %p644_p4 = scmp.lt.u32.totalorder %s637_s12, %s1005_s0 }
  0x1d   : > { %p640_p10 = pnand %p639_p9, %p638_p8 }
  0x1f   : > { %p641_p2 = pneg %p640_p10 }
  0x21   : > { %p646_p5 = pnand %p644_p4, %p641_p2 }
  0x23   : > { %649 = shalt.err (!%p646_p5)
}
  0x24   : > { %s650_s23 = scalar_lea.vmem %s165_s5, 64  ;;  %p658_p11 = scmp.lt.s32.totalorder %s165_s5, %s165_s5 }
  0x25   : > { %p651_p0 = scmp.ne.s32.totalorder %s165_s5, %s650_s23  ;;  %p659_p6 = scmp.lt.s32.totalorder %s650_s23, %s650_s23 }
  0x27   : > { %p653_p1 = pnand %p651_p0, %p639_p9  ;;  %p660_p13 = por %p659_p6, %p658_p11 }
  0x29   : > { %p654_p12 = pneg %p653_p1 }
  0x2b   : > { %p661_p3 = pnand %p660_p13, %p654_p12 }
  0x2d   : > { %664 = shalt.err (!%p661_p3)
}
  0x2e   : > { %576 = dma.hbm_to_vmem [thread:$0]  (!%p870_p7), %s1005_s0, 64, %s165_s5, [#allocation3]  }
  0x2f   : > { %s518_s10 = sshll.u32 %s765_s18, 6  ;;  %s179_s11 = scalar_lea.vmem [#allocation5], %s517_s9 }
  0x30   : > { %s185_s12 = sshll.u32 %s179_s11, 4  ;;  %s901_s20 = scalar_lea.hbm %s1006_s1, %s518_s10  ;;  %s903_s12 = int_to_ptr.vmem [resolvable:$true] %s185_s12 }
  0x31   : > { %s905_s6 = scalar_lea.sflag [#allocation6], %s175_s7  ;;  %s665_s22 = scalar_lea.hbm %s901_s20, 1024 }
  0x32   : > { %p666_p6 = scmp.ne.s32.totalorder %s901_s20, %s665_s22  ;;  %p1023_p11 = scmp.ne.s32.totalorder %s1022_s8, 0 }
  0x33   : > { %s670_s23 = scalar_lea.hbm %s1006_s1, 2048  ;;  %p671_p7 = scmp.lt.u32.totalorder %s901_s20, %s1006_s1 }
  0x34   : > { %p667_p12 = pneg %p1023_p11  ;;  %p672_p3 = scmp.lt.u32.totalorder %s670_s23, %s665_s22 }
  0x35   : > { %p674_p9 = scmp.lt.u32.totalorder %s665_s22, %s901_s20 }
  0x36   : > { %p668_p13 = pnand %p667_p12, %p666_p6  ;;  %p673_p8 = por %p672_p3, %p671_p7 }
  0x38   : > { %p669_p1 = pneg %p668_p13  ;;  %p675_p10 = por %p674_p9, %p673_p8 }
  0x3a   : > { %p676_p2 = pnand %p675_p10, %p669_p1 }
  0x3c   : > { %679 = shalt.err (!%p676_p2)
}
  0x3d   : > { %s680_s7 = scalar_lea.vmem %s903_s12, 1024  ;;  %s768_s10 = smov [#allocation5]  }
  0x3e   : > { %p681_p4 = scmp.ne.s32.totalorder %s903_s12, %s680_s7  ;;  %s685_s11 = sshll.u32 %s768_s10, 4  ;;  %s686_s11 = int_to_ptr.vmem [resolvable:$false] %s685_s11 }
  0x3f   : > { %s687_s13 = scalar_lea.vmem %s686_s11, 2048  ;;  %p688_p6 = scmp.lt.s32.totalorder %s903_s12, %s686_s11 }
  0x40   : > { %p683_p5 = pnand %p681_p4, %p667_p12  ;;  %p689_p13 = scmp.lt.s32.totalorder %s687_s13, %s680_s7 }
  0x42   : > { %p684_p0 = pneg %p683_p5  ;;  %p690_p7 = por %p689_p13, %p688_p6 }
  0x44   : > { %p691_p3 = pnand %p690_p7, %p684_p0 }
  0x46   : > { %694 = shalt.err (!%p691_p3)
}
  0x47   : > { %s769_s14 = smov 128   ;;  %s770_s22 = smov 64  }
  0x48   : > { %s771_s5 = smov 4   ;;  %p1024_p12 = scmp.ne.s32.totalorder %s1019_s29, 0 }
  0x49   : > { %580 = dma.hbm_to_vmem [thread:$0]  (!%p1023_p11), %s901_s20, 1024, %s903_s12, %s905_s6, %s769_s14, %s770_s22, %s771_s5  }
  0x4a   : > { %209 = sbr.rel (%p1024_p12) target bundleno = 400 (0x190), region = 36  ;;  %p1025_p1 = scmp.eq.s32.totalorder (!%p1024_p12), %s821_s19, 0 }
  0x51   : > { %740 = dma.done.wait (%p1025_p1), [#allocation3], 64   ;;  %p1026_p8 = pmov %p1025_p1 }
  0x52   : > { %s940_s9 = sand.u32 1, %s757_s16   ;;  %p1027_p9 = scmp.ne.s32.totalorder %s1016_s26, 0 }
  0x53   : > { %742 = vsyncadd (%p1026_p8), [#allocation3], 4294967232  ;;  %s521_s23 = sshll.u32 %s940_s9, 6  ;;  %s216_s25 = scalar_lea.sflag [#allocation6], %s940_s9 }
  0x54   : > { %s219_s30 = scalar_lea.vmem [#allocation5], %s521_s23 }
  0x55   : > { %744 = dma.done.wait (%p1027_p9), %s216_s25, 1024  }
  0x56   : > { %746 = vsyncadd (%p1027_p9), %s216_s25, 4294966272  ;;  %v772_v0 = vmov 0.0   ;;  %vm773_vm0 = vmmov 0   ;;  %v627_v1 = vld [vmem:[%s219_s30] sm:$0xff]   ;;  %v628_v2 = vld [vmem:[%s219_s30 + $0x8] sm:$0xff]   ;;  %p250_p11 = scmp.lt.s32.totalorder %s821_s19, 1  ;;  %v383_v31 = vlaneseq }
  0x57   : > { %545 = vmatprep.subr.bf16.mxu0 %v772_v0  ;;  %561 = vmatprep.mubr.msk.bf16.mxu0 %vm773_vm0, %v772_v0  ;;  %v629_v3 = vld [vmem:[%s219_s30 + $0x10] sm:$0xff]   ;;  %v630_v4 = vld [vmem:[%s219_s30 + $0x18] sm:$0xff]   ;;  %v631_v5 = vld [vmem:[%s219_s30 + $0x20] sm:$0xff]   ;;  %s522_s20 = sshll.u32 %s940_s9, 3  ;;  %s533_s11 = sshll.u32 %s821_s19, 7 }
  0x58   : > { %546 = vmatpush3.bf16.msra.mxu0 %v627_v1  ;;  %v632_v6 = vld [vmem:[%s219_s30 + $0x28] sm:$0xff]   ;;  %v633_v7 = vld [vmem:[%s219_s30 + $0x30] sm:$0xff]   ;;  %v634_v8 = vld [vmem:[%s219_s30 + $0x38] sm:$0xff]   ;;  %s251_s26 = scalar_select %p250_p11, %s821_s19, 1  ;;  %v384_v32 = vshrl.u32 %v383_v31, 7 }
  0x59   : > { %547 = vmatprep.subr.bf16.mxu0 %v772_v0  ;;  %v257_v9 = vld [vmem:[#allocation2] sm:$0xf]  ;;  %s249_s13 = scalar_lea.vmem [#allocation7], %s522_s20  ;;  %s961_s23 = scalar_lea.hbm %s1009_s4, %s533_s11 }
  0x5a   : > { %s252_s12 = scalar_lea.vmem %s1007_s2, %s251_s26  ;;  %v385_v34 = vsub.s32 0, %v384_v32  ;;  %s255_s10 = scalar_lea.vmem %s1008_s3, %s251_s26 }
  0x5b   : > { %v378_v33 = vld [vmem:[%s252_s12] sm:$0x1]  ;;  %s413_s14 = sshll.u32 %s249_s13, 4  ;;  %s400_s25 = scalar_lea.sflag [#allocation4], %s940_s9  ;;  %s963_s14 = int_to_ptr.vmem [resolvable:$true] %s413_s14 }
  0x5c   : > { %548 = vmatpush3.bf16.msra.mxu0 %v628_v2  ;;  %v531_v38 = vld [vmem:[%s255_s10] ss:$0 sm:$0xff]  ;;  %s695_s30 = scalar_lea.vmem %s963_s14, 128  ;;  %p1028_p2 = scmp.ne.s32.totalorder %s1017_s27, 0 }
  0x5d   : > { %549 = vmatprep.subr.bf16.mxu0 %v772_v0  ;;  %p696_p10 = scmp.ne.s32.totalorder %s963_s14, %s695_s30  ;;  %s774_s19 = smov [#allocation7]  }
  0x5e   : > { %s699_s26 = sshll.u32 %s774_s19, 4  ;;  %s700_s26 = int_to_ptr.vmem [resolvable:$false] %s699_s26 }
  0x5f   : > { %p697_p4 = pnand %p696_p10, %p1028_p2  ;;  %s701_s29 = scalar_lea.vmem %s700_s26, 256 }
  0x60   : > { %550 = vmatpush3.bf16.msra.mxu0 %v629_v3  ;;  %p702_p0 = scmp.lt.s32.totalorder %s963_s14, %s700_s26  ;;  %p703_p6 = scmp.lt.s32.totalorder %s701_s29, %s695_s30 }
  0x61   : > { %551 = vmatprep.subr.bf16.mxu0 %v772_v0  ;;  %p698_p5 = pneg %p697_p4 }
  0x62   : > { %p704_p13 = por %p703_p6, %p702_p0 }
  0x64   : > { %552 = vmatpush3.bf16.msra.mxu0 %v630_v4  ;;  %p705_p7 = pnand %p704_p13, %p698_p5 }
  0x65   : > { %553 = vmatprep.subr.bf16.mxu0 %v772_v0 }
  0x68   : > { %554 = vmatpush3.bf16.msra.mxu0 %v631_v5 }
  0x69   : > { %555 = vmatprep.subr.bf16.mxu0 %v772_v0 }
  0x6c   : > { %556 = vmatpush3.bf16.msra.mxu0 %v632_v6 }
  0x6d   : > { %557 = vmatprep.subr.bf16.mxu0 %v772_v0 }
  0x70   : > { %558 = vmatpush3.bf16.msra.mxu0 %v633_v7 }
  0x71   : > { %559 = vmatprep.subr.bf16.mxu0 %v772_v0 }
  0x74   : > { %560 = vmatpush3.bf16.msra.mxu0 %v634_v8 }
  0x77   : > { %562 = vmatmul.mubr.bf16.vlgmr.msra.gmra.mrb[0].mxu0 %v257_v9 }
 0x14a   : > { %v356_v10 = vpop.f32.mrb[0].mxu0 }
 0x14b   : > { %v362_v11 = vrot.slane %v356_v10, 4  ;;  %v563_v12 = vpop.f32.mrb[1].mxu0 }
 0x14c   : > { %v359_v13 = vpop.f32.mrb[2].mxu0 }
 0x14d   : > { %v363_v14 = vadd.f32 %v362_v11, %v356_v10  ;;  %v564_v15 = vpop.f32.mrb[3].mxu0 }
 0x14f   : > { %v364_v16 = vrot.slane %v363_v14, 2 }
 0x151   : > { %v365_v17 = vadd.f32 %v364_v16, %v363_v14 }
 0x153   : > { %v366_v18 = vrot.slane %v365_v17, 1 }
 0x155   : > { %v367_v19 = vadd.f32 %v366_v18, %v365_v17 }
 0x157   : > { %v368_v20 = vmul.f32 0.125, %v367_v19 }
 0x159   : > { %v369_v21 = vsub.f32 %v356_v10, %v368_v20 }
 0x15b   : > { %v370_v22 = vmul.f32 %v369_v21, %v369_v21 }
 0x15d   : > { %v371_v23 = vrot.slane %v370_v22, 4 }
 0x15f   : > { %v372_v24 = vadd.f32 %v371_v23, %v370_v22 }
 0x161   : > { %v373_v25 = vrot.slane %v372_v24, 2 }
 0x163   : > { %v374_v26 = vadd.f32 %v373_v25, %v372_v24 }
 0x165   : > { %v375_v27 = vrot.slane %v374_v26, 1 }
 0x167   : > { %v376_v28 = vadd.f32 %v375_v27, %v374_v26 }
 0x169   : > { %v377_v29 = vmul.f32 0.125, %v376_v28 }
 0x16b   : > { %v379_v30 = vadd.f32 1e-05, %v377_v29 }
 0x16d   : > { %635 = vrsqrt.f32 %v379_v30 }
 0x177   : > { %v636_v35 = vpop.eup %635 }
 0x178   : > { %v381_v36 = vmul.f32 %v636_v35, %v378_v33 }
 0x17a   : > { %v386_v37 = vrot.slane %v381_v36, %v385_v34 }
 0x17c   : > { %v388_v39 = vmul.f32 %v386_v37, %v369_v21 }
 0x17e   : > { %v396_v40 = vadd.f32 %v531_v38, %v388_v39 }
 0x180   : > { %v397_v41 = vmax.f32 %v396_v40, 0.0 }
 0x182   : > { %398 = vst [vmem:[%s249_s13] sm:$0xff] %v397_v41 }
 0x183   : > { %708 = shalt.err (!%p705_p7)
}
 0x184   : > { %s709_s9 = scalar_lea.hbm %s961_s23, 128  ;;  %s713_s20 = scalar_lea.hbm %s1009_s4, 256 }
 0x185   : > { %p710_p3 = scmp.ne.s32.totalorder %s961_s23, %s709_s9  ;;  %p714_p8 = scmp.lt.u32.totalorder %s961_s23, %s1009_s4 }
 0x186   : > { %p715_p9 = scmp.lt.u32.totalorder %s713_s20, %s709_s9  ;;  %p717_p10 = scmp.lt.u32.totalorder %s709_s9, %s961_s23 }
 0x187   : > { %p711_p12 = pnand %p710_p3, %p1028_p2 }
 0x188   : > { %p716_p11 = por %p715_p9, %p714_p8 }
 0x189   : > { %p712_p1 = pneg %p711_p12 }
 0x18a   : > { %p718_p4 = por %p717_p10, %p716_p11 }
 0x18c   : > { %p719_p5 = pnand %p718_p4, %p712_p1 }
 0x18e   : > { %722 = shalt.err (!%p719_p5)
}
 0x18f   : > { %571 = dma.vmem_to_hbm [thread:$0]  (%p1028_p2), %s963_s14, 128, %s961_s23, %s400_s25  }
 0x190 PF: > { %s425_s10 = sand.u32 1, %s753_s15   ;;  %p1029_p0 = scmp.ne.s32.totalorder %s1018_s28, 0 }
 0x191   : > { %p1030_p6 = scmp.ge.s32.totalorder %s765_s18, 2  ;;  %s426_s11 = scalar_lea.sflag [#allocation4], %s425_s10 }
 0x193   : > { %p582_p13 = pnand %p1030_p6, %p1029_p0 }
 0x195   : > { %748 = dma.done.wait (!%p582_p13), %s426_s11, 128  }
 0x196   : > { %750 = vsyncadd (!%p582_p13), %s426_s11, 4294967168  ;;  %p18_p7 = scmp.ge.s32.totalorder %s825_s21, 4   ;;  %s1031_s15 = smov %s757_s16 }
 0x197   : > { %s1032_s16 = smov %s761_s17  ;;  %s1033_s17 = smov %s837_s24 }
 0x198   : > { %s1034_s18 = smov %s825_s21  ;;  %20 = sbr.rel (!%p18_p7) target bundleno = 6 (0x6), region = 92 }
 0x19f   :  { %431 = vsyncpa [#allocation3], 1 }
 0x1a0   :  { %433 = vsyncpa [#allocation3 + $0x1], 1 }
 0x1a1   :  { %434 = vsyncpa [#allocation6], 1 }
 0x1a2   :  { %436 = vsyncpa [#allocation6 + $0x1], 1 }
 0x1a3   :  { %437 = vsyncpa [#allocation4], 1 }
 0x1a4   :  { %439 = vsyncpa [#allocation4 + $0x1], 1 }

</bundles_post_ra>
